<compile_context>
chip_gen: v6e
topology: v6e:2x2x1
jax: 0.10.0
libtpu: 0.0.40
codegen_flags: <defaults>
</compile_context>

<pallas_src>
import functools

import jax
import jax.numpy as jnp
from jax.experimental import pallas as pl
from jax.experimental.pallas import tpu as pltpu

TEMPERATURE = 1.0  # matches the PyTorch module


def _round_up(x, m):
    return ((x + m - 1) // m) * m


def _supcon_kernel(tl_ref, it_ref, bias_ref, text_ref, img_ref, mlpp_ref,
                   m_sc, l_sc, sml_sc, sm_sc, *, apply_col_bias):
    ni = pl.program_id(1)

    @pl.when(ni == 0)
    def _init():
        m_sc[...] = jnp.full_like(m_sc, -jnp.inf)
        l_sc[...] = jnp.zeros_like(l_sc)
        sml_sc[...] = jnp.zeros_like(sml_sc)
        sm_sc[...] = jnp.zeros_like(sm_sc)

    # Contraction over the last (feature) dim of both operands: A.B^T is
    # MXU-native in Mosaic (no per-tile relayout/transpose of the image
    # block), f32 accumulation.
    logits = jax.lax.dot_general(
        text_ref[...], img_ref[...],
        dimension_numbers=(((1,), (1,)), ((), ())),
        preferred_element_type=jnp.float32)                      # (TB, TN) f32

    # Positives for this tile.  Padded image columns carry an int32-min
    # sentinel target, so no column-validity mask is needed here.
    pos_f = (tl_ref[...] == it_ref[...]).astype(jnp.float32)     # (TB, TN)
    sml_sc[...] += jnp.sum(pos_f * logits, axis=1, keepdims=True)
    sm_sc[...] += jnp.sum(pos_f, axis=1, keepdims=True)

    # Online softmax log-normalizer (running max m, running sum-exp l).
    # Padded columns (only present when N % TN != 0) are pushed to -1e30 via
    # a precomputed bias row: one VPU add instead of iota+compare+where.
    if apply_col_bias:
        masked = logits + bias_ref[...]
    else:
        masked = logits
    m_new = jnp.maximum(m_sc[...], jnp.max(masked, axis=1, keepdims=True))
    alpha = jnp.exp(m_sc[...] - m_new)
    l_sc[...] = alpha * l_sc[...] + jnp.sum(jnp.exp(masked - m_new),
                                            axis=1, keepdims=True)
    m_sc[...] = m_new

    @pl.when(ni == pl.num_programs(1) - 1)
    def _finalize():
        # mean_log_prob_pos = sum(pos*logits)/sum(pos) - max - log(sum exp(logits - max))
        inv_sm = pl.reciprocal(sm_sc[...], approx=False)
        mlpp_ref[...] = sml_sc[...] * inv_sm - m_sc[...] - jnp.log(l_sc[...])


def supcon_loss(text_features, image_features, t_label, i_targets,
                temperature=TEMPERATURE):
    """Pallas TPU implementation of SupConLoss.forward."""
    B, D = text_features.shape
    N, D2 = image_features.shape
    assert D == D2, "feature dims must match"

    # Hoist 1/T out of the kernel: applied once to the (B, D) text features
    # instead of per N tile.  (No-op for the module's temperature = 1.0.)
    if temperature != 1.0:
        text_features = text_features * jnp.asarray(
            1.0 / temperature, dtype=text_features.dtype)

    # ---- tile selection ------------------------------------------------
    # TB: multiple of 256 (fills the 256-row MXU on v6e/v7x, 2x native on
    # v5e); 512 only when B is very large.  TB = 256 also keeps >= 2 B tiles
    # for B >= 512 so v7x's second TensorCore gets work via
    # dimension_semantics=("parallel", ...).  Small B just rounds up to a
    # sublane/bf16-friendly multiple of 16.
    if B >= 2048:
        TB = 512
    elif B >= 256:
        TB = 256
    else:
        TB = _round_up(B, 16)
    # TN: lane-dense, target 1024 columns per step.
    TN = min(1024, _round_up(N, 128))

    # Crude VMEM budget: double-buffered input blocks + f32 (TB,TN)
    # temporaries (logits / pos / exp) + the four (TB,1) scratches, which
    # each pad to (TB,128) lanes.  Shrink TN, then TB, if over budget.
    in_bytes = jnp.dtype(text_features.dtype).itemsize

    def _vmem_estimate(tb, tn):
        return (2 * (tb * D + tn * D) * in_bytes     # double-buffered text/image blocks
                + 4 * tb * tn * 4                    # in-kernel f32 temporaries
                + 4 * tb * 128 * 4)                  # (TB,1) scratches pad to (TB,128)

    VMEM_BUDGET = 40 * 1024 * 1024
    while _vmem_estimate(TB, TN) > VMEM_BUDGET and TN > 128:
        TN = max(128, _round_up(TN // 2, 128))
    while _vmem_estimate(TB, TN) > VMEM_BUDGET and TB > 128:
        TB = max(128, TB // 2)

    B_pad = _round_up(B, TB)
    N_pad = _round_up(N, TN)

    # ---- pad inputs ------------------------------------------------------
    tf = text_features if B_pad == B else jnp.pad(
        text_features, ((0, B_pad - B), (0, 0)))
    imf = image_features if N_pad == N else jnp.pad(
        image_features, ((0, N_pad - N), (0, 0)))
    tl = jnp.pad(t_label.astype(jnp.int32).reshape(B, 1),
                 ((0, B_pad - B), (0, 0)))
    # Sentinel-pad image targets so padded columns never count as positives
    # (real labels are non-negative class indices, so int32-min never matches).
    sentinel = jnp.iinfo(jnp.int32).min
    it = jnp.pad(i_targets.astype(jnp.int32).reshape(1, N),
                 ((0, 0), (0, N_pad - N)), constant_values=sentinel)
    # Softmax column bias: 0 on valid columns, -1e30 on padded columns.
    has_col_pad = (N_pad != N)
    col_bias = jnp.pad(jnp.zeros((1, N), jnp.float32),
                       ((0, 0), (0, N_pad - N)), constant_values=-1e30)

    grid = (B_pad // TB, N_pad // TN)

    kernel = functools.partial(_supcon_kernel, apply_col_bias=has_col_pad)

    vmem_limit = int(min(max(2 * _vmem_estimate(TB, TN), 32 * 1024 * 1024),
                         48 * 1024 * 1024))

    mlpp = pl.pallas_call(
        kernel,
        out_shape=jax.ShapeDtypeStruct((B_pad, 1), jnp.float32),
        grid_spec=pltpu.PrefetchScalarGridSpec(
            num_scalar_prefetch=0,
            grid=grid,
            in_specs=[
                pl.BlockSpec((TB, 1), lambda bi, ni: (bi, 0)),   # t_label   (B_pad, 1)
                pl.BlockSpec((1, TN), lambda bi, ni: (0, ni)),   # i_targets (1, N_pad)
                pl.BlockSpec((1, TN), lambda bi, ni: (0, ni)),   # col bias  (1, N_pad)
                pl.BlockSpec((TB, D), lambda bi, ni: (bi, 0)),   # text      (B_pad, D)
                pl.BlockSpec((TN, D), lambda bi, ni: (ni, 0)),   # image     (N_pad, D)
            ],
            out_specs=pl.BlockSpec((TB, 1), lambda bi, ni: (bi, 0)),
            # m, l, sum(pos*logit), sum(pos) -- each (TB,1) pads to (TB,128)
            # lanes; accounted for in the VMEM budget above.
            scratch_shapes=[pltpu.VMEM((TB, 1), jnp.float32)] * 4,
        ),
        compiler_params=pltpu.CompilerParams(
            dimension_semantics=("parallel", "arbitrary"),
            vmem_limit_bytes=vmem_limit),
    )(tl, it, col_bias, tf, imf)

    # Tiny final reduction over the valid rows only (padded rows may be NaN;
    # they must be sliced off BEFORE the sum).
    return -jnp.sum(mlpp[:B, 0]) * (1.0 / B)


def _reference(text_features, image_features, t_label, i_targets,
               temperature=TEMPERATURE):
    # Pure-JAX reference mirroring the PyTorch forward exactly (f32).
    tf = text_features.astype(jnp.float32)
    imf = image_features.astype(jnp.float32)
    mask = (t_label[:, None] == i_targets[None, :]).astype(jnp.float32)
    logits = (tf @ imf.T) / temperature
    logits = logits - jnp.max(logits, axis=1, keepdims=True)
    log_prob = logits - jnp.log(jnp.sum(jnp.exp(logits), axis=1, keepdims=True))
    mean_log_prob_pos = jnp.sum(mask * log_prob, axis=1) / jnp.sum(mask, axis=1)
    return -jnp.mean(mean_log_prob_pos)


def _make_inputs(key, B, N, D, num_classes, dtype):
    k1, k2, k3, k4 = jax.random.split(key, 4)
    text_features = jax.random.normal(k1, (B, D), dtype=jnp.float32).astype(dtype)
    image_features = jax.random.normal(k2, (N, D), dtype=jnp.float32).astype(dtype)
    t_label = jax.random.randint(k3, (B,), 0, num_classes, dtype=jnp.int32)
    i_targets = jax.random.randint(k4, (N,), 0, num_classes, dtype=jnp.int32)
    # Guarantee every text row has at least one positive image target
    # (avoids the divide-by-zero / NaN case, matching PyTorch's undefined
    # behavior there, which is not meaningful to test).
    i_targets = i_targets.at[:B].set(t_label)
    return text_features, image_features, t_label, i_targets


if __name__ == "__main__":
    key = jax.random.PRNGKey(0)
    k_small, k_big = jax.random.split(key, 2)

    # --- small f32 check (primary) ---
    B, N, D = 8, 8, 32
    tfeat, ifeat, tlab, itgt = _make_inputs(k_small, B, N, D, 4, jnp.float32)
    loss = supcon_loss(tfeat, ifeat, tlab, itgt)
    jax.block_until_ready(loss)
    ref = _reference(tfeat, ifeat, tlab, itgt)
    assert jnp.allclose(loss, ref, rtol=1e-4, atol=1e-4), (loss, ref)

    # --- padded / lane-padded-N f32 check (exercises online softmax, sentinel
    # targets and the padded-column bias path) ---
    B2, N2, D2 = 24, 300, 32
    tfeat2, ifeat2, tlab2, itgt2 = _make_inputs(k_big, B2, N2, D2, 6, jnp.float32)
    loss2 = supcon_loss(tfeat2, ifeat2, tlab2, itgt2)
    jax.block_until_ready(loss2)
    ref2 = _reference(tfeat2, ifeat2, tlab2, itgt2)
    assert jnp.allclose(loss2, ref2, rtol=1e-4, atol=1e-4), (loss2, ref2)

    # --- bf16 feature path (MXU bf16, f32 accumulation) ---
    tf_bf = tfeat2.astype(jnp.bfloat16)
    if_bf = ifeat2.astype(jnp.bfloat16)
    loss_bf = supcon_loss(tf_bf, if_bf, tlab2, itgt2)
    jax.block_until_ready(loss_bf)
    ref_bf = _reference(tf_bf.astype(jnp.float32), if_bf.astype(jnp.float32),
                        tlab2, itgt2)
    assert jnp.allclose(loss_bf, ref_bf, rtol=2e-2, atol=2e-2), (loss_bf, ref_bf)

    print("KERNEL_OK")
</pallas_src>

<mosaic_0001>
module attributes {stable_mosaic.version = 11 : i64} {
  func.func @_supcon_kernel(%arg0: i32, %arg1: i32, %arg2: memref<16x1xi32, #tpu.memory_space<vmem>>, %arg3: memref<1x128xi32, #tpu.memory_space<vmem>>, %arg4: memref<1x128xf32, #tpu.memory_space<vmem>>, %arg5: memref<16x32xf32, #tpu.memory_space<vmem>>, %arg6: memref<128x32xf32, #tpu.memory_space<vmem>>, %arg7: memref<16x1xf32, #tpu.memory_space<vmem>>, %arg8: memref<16x1xf32, #tpu.memory_space<vmem>>, %arg9: memref<16x1xf32, #tpu.memory_space<vmem>>, %arg10: memref<16x1xf32, #tpu.memory_space<vmem>>, %arg11: memref<16x1xf32, #tpu.memory_space<vmem>>) attributes {dimension_semantics = [#tpu.dimension_semantics<parallel>, #tpu.dimension_semantics<arbitrary>], iteration_bounds = array<i64: 1, 1>, scalar_prefetch = 0 : i64, scratch_operands = 4 : i64, tpu.core_type = #tpu.core_type<tc>, window_params = [{transform_indices = @transform_0, window_bounds = array<i64: 16, 1>}, {transform_indices = @transform_1, window_bounds = array<i64: 1, 128>}, {transform_indices = @transform_2, window_bounds = array<i64: 1, 128>}, {transform_indices = @transform_3, window_bounds = array<i64: 16, 32>}, {transform_indices = @transform_4, window_bounds = array<i64: 128, 32>}, {transform_indices = @transform_5, window_bounds = array<i64: 16, 1>}]} {
    %c0_i32 = arith.constant 0 : i32
    %0 = arith.cmpi eq, %arg1, %c0_i32 : i32
    %1 = arith.extui %0 : i1 to i32
    %c0_i32_0 = arith.constant 0 : i32
    %2 = arith.cmpi ne, %1, %c0_i32_0 : i32
    scf.if %2 {
      %cst_34 = arith.constant 0xFF800000 : f32
      %47 = vector.broadcast %cst_34 : f32 to vector<16x1xf32>
      %c0_35 = arith.constant 0 : index
      %c0_36 = arith.constant 0 : index
      %48 = vector.load %arg8[%c0_35, %c0_36] : memref<16x1xf32, #tpu.memory_space<vmem>>, vector<16x1xf32>
      tpu.vector_store %arg8[%c0_35, %c0_36], %47 {strides = array<i32>} : memref<16x1xf32, #tpu.memory_space<vmem>>, vector<16x1xf32>,
      %cst_37 = arith.constant 0.000000e+00 : f32
      %49 = vector.broadcast %cst_37 : f32 to vector<16x1xf32>
      %c0_38 = arith.constant 0 : index
      %c0_39 = arith.constant 0 : index
      %50 = vector.load %arg9[%c0_38, %c0_39] : memref<16x1xf32, #tpu.memory_space<vmem>>, vector<16x1xf32>
      tpu.vector_store %arg9[%c0_38, %c0_39], %49 {strides = array<i32>} : memref<16x1xf32, #tpu.memory_space<vmem>>, vector<16x1xf32>,
      %cst_40 = arith.constant 0.000000e+00 : f32
      %51 = vector.broadcast %cst_40 : f32 to vector<16x1xf32>
      %c0_41 = arith.constant 0 : index
      %c0_42 = arith.constant 0 : index
      %52 = vector.load %arg10[%c0_41, %c0_42] : memref<16x1xf32, #tpu.memory_space<vmem>>, vector<16x1xf32>
      tpu.vector_store %arg10[%c0_41, %c0_42], %51 {strides = array<i32>} : memref<16x1xf32, #tpu.memory_space<vmem>>, vector<16x1xf32>,
      %cst_43 = arith.constant 0.000000e+00 : f32
      %53 = vector.broadcast %cst_43 : f32 to vector<16x1xf32>
      %c0_44 = arith.constant 0 : index
      %c0_45 = arith.constant 0 : index
      %54 = vector.load %arg11[%c0_44, %c0_45] : memref<16x1xf32, #tpu.memory_space<vmem>>, vector<16x1xf32>
      tpu.vector_store %arg11[%c0_44, %c0_45], %53 {strides = array<i32>} : memref<16x1xf32, #tpu.memory_space<vmem>>, vector<16x1xf32>,
    } else {
    }
    %c0 = arith.constant 0 : index
    %c0_1 = arith.constant 0 : index
    %3 = vector.load %arg5[%c0, %c0_1] : memref<16x32xf32, #tpu.memory_space<vmem>>, vector<16x32xf32>
    %c0_2 = arith.constant 0 : index
    %c0_3 = arith.constant 0 : index
    %4 = vector.load %arg6[%c0_2, %c0_3] : memref<128x32xf32, #tpu.memory_space<vmem>>, vector<128x32xf32>
    %cst = arith.constant dense<0.000000e+00> : vector<16x128xf32>
    %5 = tpu.matmul %3, %4, %cst {dimension_numbers = #tpu.dot_dimension_numbers<[1], [1], [0], [0], [0, 0, 1, 0], [], []>} : vector<16x32xf32>, vector<128x32xf32>, vector<16x128xf32> -> vector<16x128xf32>
    %c0_4 = arith.constant 0 : index
    %c0_5 = arith.constant 0 : index
    %6 = vector.load %arg2[%c0_4, %c0_5] : memref<16x1xi32, #tpu.memory_space<vmem>>, vector<16x1xi32>
    %c0_6 = arith.constant 0 : index
    %c0_7 = arith.constant 0 : index
    %7 = vector.load %arg3[%c0_6, %c0_7] : memref<1x128xi32, #tpu.memory_space<vmem>>, vector<1x128xi32>
    %8 = vector.broadcast %6 : vector<16x1xi32> to vector<16x128xi32>
    %9 = vector.broadcast %7 : vector<1x128xi32> to vector<16x128xi32>
    %10 = arith.cmpi eq, %8, %9 : vector<16x128xi32>
    %11 = arith.extui %10 : vector<16x128xi1> to vector<16x128xi32>
    %12 = arith.sitofp %11 : vector<16x128xi32> to vector<16x128xf32>
    %c0_8 = arith.constant 0 : index
    %c0_9 = arith.constant 0 : index
    %13 = vector.load %arg10[%c0_8, %c0_9] : memref<16x1xf32, #tpu.memory_space<vmem>>, vector<16x1xf32>
    %14 = arith.mulf %12, %5 : vector<16x128xf32>
    %cst_10 = arith.constant dense<0.000000e+00> : vector<16xf32>
    %15 = vector.multi_reduction <add>, %14, %cst_10 [1] : vector<16x128xf32> to vector<16xf32>
    %16 = vector.shape_cast %15 : vector<16xf32> to vector<16x1xf32>
    %17 = arith.addf %13, %16 : vector<16x1xf32>
    %c0_11 = arith.constant 0 : index
    %c0_12 = arith.constant 0 : index
    %18 = vector.load %arg10[%c0_11, %c0_12] : memref<16x1xf32, #tpu.memory_space<vmem>>, vector<16x1xf32>
    tpu.vector_store %arg10[%c0_11, %c0_12], %17 {strides = array<i32>} : memref<16x1xf32, #tpu.memory_space<vmem>>, vector<16x1xf32>,
    %c0_13 = arith.constant 0 : index
    %c0_14 = arith.constant 0 : index
    %19 = vector.load %arg11[%c0_13, %c0_14] : memref<16x1xf32, #tpu.memory_space<vmem>>, vector<16x1xf32>
    %cst_15 = arith.constant dense<0.000000e+00> : vector<16xf32>
    %20 = vector.multi_reduction <add>, %12, %cst_15 [1] : vector<16x128xf32> to vector<16xf32>
    %21 = vector.shape_cast %20 : vector<16xf32> to vector<16x1xf32>
    %22 = arith.addf %19, %21 : vector<16x1xf32>
    %c0_16 = arith.constant 0 : index
    %c0_17 = arith.constant 0 : index
    %23 = vector.load %arg11[%c0_16, %c0_17] : memref<16x1xf32, #tpu.memory_space<vmem>>, vector<16x1xf32>
    tpu.vector_store %arg11[%c0_16, %c0_17], %22 {strides = array<i32>} : memref<16x1xf32, #tpu.memory_space<vmem>>, vector<16x1xf32>,
    %c0_18 = arith.constant 0 : index
    %c0_19 = arith.constant 0 : index
    %24 = vector.load %arg4[%c0_18, %c0_19] : memref<1x128xf32, #tpu.memory_space<vmem>>, vector<1x128xf32>
    %25 = vector.broadcast %24 : vector<1x128xf32> to vector<16x128xf32>
    %26 = arith.addf %5, %25 : vector<16x128xf32>
    %c0_20 = arith.constant 0 : index
    %c0_21 = arith.constant 0 : index
    %27 = vector.load %arg8[%c0_20, %c0_21] : memref<16x1xf32, #tpu.memory_space<vmem>>, vector<16x1xf32>
    %cst_22 = arith.constant dense<0xFF800000> : vector<16xf32>
    %28 = vector.multi_reduction <maximumf>, %26, %cst_22 [1] : vector<16x128xf32> to vector<16xf32>
    %29 = vector.shape_cast %28 : vector<16xf32> to vector<16x1xf32>
    %30 = arith.maximumf %27, %29 : vector<16x1xf32>
    %c0_23 = arith.constant 0 : index
    %c0_24 = arith.constant 0 : index
    %31 = vector.load %arg8[%c0_23, %c0_24] : memref<16x1xf32, #tpu.memory_space<vmem>>, vector<16x1xf32>
    %32 = arith.subf %31, %30 : vector<16x1xf32>
    %33 = math.exp %32 : vector<16x1xf32>
    %c0_25 = arith.constant 0 : index
    %c0_26 = arith.constant 0 : index
    %34 = vector.load %arg9[%c0_25, %c0_26] : memref<16x1xf32, #tpu.memory_space<vmem>>, vector<16x1xf32>
    %35 = arith.mulf %33, %34 : vector<16x1xf32>
    %36 = vector.broadcast %30 : vector<16x1xf32> to vector<16x128xf32>
    %37 = arith.subf %26, %36 : vector<16x128xf32>
    %38 = math.exp %37 : vector<16x128xf32>
    %cst_27 = arith.constant dense<0.000000e+00> : vector<16xf32>
    %39 = vector.multi_reduction <add>, %38, %cst_27 [1] : vector<16x128xf32> to vector<16xf32>
    %40 = vector.shape_cast %39 : vector<16xf32> to vector<16x1xf32>
    %41 = arith.addf %35, %40 : vector<16x1xf32>
    %c0_28 = arith.constant 0 : index
    %c0_29 = arith.constant 0 : index
    %42 = vector.load %arg9[%c0_28, %c0_29] : memref<16x1xf32, #tpu.memory_space<vmem>>, vector<16x1xf32>
    tpu.vector_store %arg9[%c0_28, %c0_29], %41 {strides = array<i32>} : memref<16x1xf32, #tpu.memory_space<vmem>>, vector<16x1xf32>,
    %c0_30 = arith.constant 0 : index
    %c0_31 = arith.constant 0 : index
    %43 = vector.load %arg8[%c0_30, %c0_31] : memref<16x1xf32, #tpu.memory_space<vmem>>, vector<16x1xf32>
    tpu.vector_store %arg8[%c0_30, %c0_31], %30 {strides = array<i32>} : memref<16x1xf32, #tpu.memory_space<vmem>>, vector<16x1xf32>,
    %c0_i32_32 = arith.constant 0 : i32
    %44 = arith.cmpi eq, %arg1, %c0_i32_32 : i32
    %45 = arith.extui %44 : i1 to i32
    %c0_i32_33 = arith.constant 0 : i32
    %46 = arith.cmpi ne, %45, %c0_i32_33 : i32
    scf.if %46 {
      %c0_34 = arith.constant 0 : index
      %c0_35 = arith.constant 0 : index
      %47 = vector.load %arg11[%c0_34, %c0_35] : memref<16x1xf32, #tpu.memory_space<vmem>>, vector<16x1xf32>
      %48 = tpu.reciprocal %47 : vector<16x1xf32> -> vector<16x1xf32>
      %c0_36 = arith.constant 0 : index
      %c0_37 = arith.constant 0 : index
      %49 = vector.load %arg10[%c0_36, %c0_37] : memref<16x1xf32, #tpu.memory_space<vmem>>, vector<16x1xf32>
      %50 = arith.mulf %49, %48 : vector<16x1xf32>
      %c0_38 = arith.constant 0 : index
      %c0_39 = arith.constant 0 : index
      %51 = vector.load %arg8[%c0_38, %c0_39] : memref<16x1xf32, #tpu.memory_space<vmem>>, vector<16x1xf32>
      %52 = arith.subf %50, %51 : vector<16x1xf32>
      %c0_40 = arith.constant 0 : index
      %c0_41 = arith.constant 0 : index
      %53 = vector.load %arg9[%c0_40, %c0_41] : memref<16x1xf32, #tpu.memory_space<vmem>>, vector<16x1xf32>
      %54 = math.log %53 : vector<16x1xf32>
      %55 = arith.subf %52, %54 : vector<16x1xf32>
      %c0_42 = arith.constant 0 : index
      %c0_43 = arith.constant 0 : index
      %56 = vector.load %arg7[%c0_42, %c0_43] : memref<16x1xf32, #tpu.memory_space<vmem>>, vector<16x1xf32>
      tpu.vector_store %arg7[%c0_42, %c0_43], %55 {strides = array<i32>} : memref<16x1xf32, #tpu.memory_space<vmem>>, vector<16x1xf32>,
    } else {
    }
    return
  }
  func.func @transform_0(%arg0: i32, %arg1: i32) -> (i32, i32) {
    %c0_i32 = arith.constant 0 : i32
    %c0_i32_0 = arith.constant 0 : i32
    return %arg0, %c0_i32 : i32, i32
  }
  func.func @transform_1(%arg0: i32, %arg1: i32) -> (i32, i32) {
    %c0_i32 = arith.constant 0 : i32
    %c0_i32_0 = arith.constant 0 : i32
    return %c0_i32, %arg1 : i32, i32
  }
  func.func @transform_2(%arg0: i32, %arg1: i32) -> (i32, i32) {
    %c0_i32 = arith.constant 0 : i32
    %c0_i32_0 = arith.constant 0 : i32
    return %c0_i32, %arg1 : i32, i32
  }
  func.func @transform_3(%arg0: i32, %arg1: i32) -> (i32, i32) {
    %c0_i32 = arith.constant 0 : i32
    %c0_i32_0 = arith.constant 0 : i32
    return %arg0, %c0_i32 : i32, i32
  }
  func.func @transform_4(%arg0: i32, %arg1: i32) -> (i32, i32) {
    %c0_i32 = arith.constant 0 : i32
    %c0_i32_0 = arith.constant 0 : i32
    return %arg1, %c0_i32 : i32, i32
  }
  func.func @transform_5(%arg0: i32, %arg1: i32) -> (i32, i32) {
    %c0_i32 = arith.constant 0 : i32
    %c0_i32_0 = arith.constant 0 : i32
    return %arg0, %c0_i32 : i32, i32
  }
}

</mosaic_0001>

<bundles_post_ra>
// kernel: tpu_custom_call.1
= control target key start
LH: loop header
LB: loop body
LE: loop exit
PB: predicated region body
PF: predicated region fallthrough
CT: control target
= control target key end

     0   :  { %vm51_vm0 = vcmask 261120   ;;  %v401_v18 = vmov 0   ;;  %vm24_vm1 = vcmask 7168   ;;  %v402_v19 = vmov -inf   ;;  %s558_s4 = inlined_call_operand.vmem [shape: f32[128,32], index: 4, kind: input, shape index: {}]   ;;  %s559_s3 = inlined_call_operand.vmem [shape: f32[16,32], index: 3, kind: input, shape index: {}]   ;;  %s560_s2 = inlined_call_operand.vmem [shape: f32[1,128], index: 2, kind: input, shape index: {}]   ;;  %s561_s0 = inlined_call_operand.vmem [shape: s32[16,1], index: 0, kind: input, shape index: {}]   ;;  %s562_s1 = inlined_call_operand.vmem [shape: s32[1,128], index: 1, kind: input, shape index: {}]   ;;  %s563_s5 = inlined_call_operand.vmem [shape: f32[16,1], index: 5, kind: output, shape index: {}]  }
   0x1   :  { %v50_v0 = vld [vmem:[%s558_s4 + $0x78] sm:$0xff]  ;;  %v49_v1 = vld [vmem:[%s558_s4 + $0x70] sm:$0xff]  ;;  %v48_v2 = vld [vmem:[%s558_s4 + $0x68] sm:$0xff]  ;;  %384 = vset.pattern.permute.xlu0 %v401_v18  ;;  %383 = vset.pattern.permute.xlu1 %v401_v18  ;;  %25 = vst.msk [vmem:[#allocation2] sm:$0xff] %vm24_vm1, %v402_v19  ;;  %v403_v25 = vmov 0.0  }
   0x2   :  { %345 = vmatprep.subr.msk.mxu0 %vm51_vm0, %v50_v0  ;;  %v33_v3 = vld [vmem:[%s559_s3] sm:$0xff]  ;;  %v46_v5 = vld [vmem:[%s558_s4 + $0x58] sm:$0xff]  ;;  %v45_v6 = vld [vmem:[%s558_s4 + $0x50] sm:$0xff]  ;;  %26 = vst.msk [vmem:[#allocation2 + $0x8] sm:$0xff] %vm24_vm1, %v402_v19 }
   0x3   :  { %346 = vmatpush3.xpose.msk.msra.mxu0 %vm51_vm0, %v50_v0  ;;  %377 = vmatprep.mubr.msk.f32.mxu0 %vm51_vm0, %v33_v3  ;;  %v47_v4 = vld [vmem:[%s558_s4 + $0x60] sm:$0xff]  ;;  %v44_v7 = vld [vmem:[%s558_s4 + $0x48] sm:$0xff]  ;;  %v42_v9 = vld [vmem:[%s558_s4 + $0x38] sm:$0xff]  ;;  %27 = vst.msk [vmem:[#allocation3] sm:$0xff] %vm24_vm1, %v403_v25 }
   0x4   :  { %347 = vmatprep.subr.msk.mxu0 %vm51_vm0, %v49_v1  ;;  %v43_v8 = vld [vmem:[%s558_s4 + $0x40] sm:$0xff]  ;;  %v41_v10 = vld [vmem:[%s558_s4 + $0x30] sm:$0xff]  ;;  %v40_v11 = vld [vmem:[%s558_s4 + $0x28] sm:$0xff]  ;;  %28 = vst.msk [vmem:[#allocation3 + $0x8] sm:$0xff] %vm24_vm1, %v403_v25 }
   0x5   :  { %v39_v12 = vld [vmem:[%s558_s4 + $0x20] sm:$0xff]  ;;  %v38_v13 = vld [vmem:[%s558_s4 + $0x18] sm:$0xff]  ;;  %v37_v14 = vld [vmem:[%s558_s4 + $0x10] sm:$0xff]  ;;  %29 = vst.msk [vmem:[#allocation4] sm:$0xff] %vm24_vm1, %v403_v25 }
   0x6   :  { %v36_v15 = vld [vmem:[%s558_s4 + $0x8] sm:$0xff]  ;;  %v35_v16 = vld [vmem:[%s558_s4] sm:$0xff]  ;;  %30 = vst.msk [vmem:[#allocation4 + $0x8] sm:$0xff] %vm24_vm1, %v403_v25  ;;  %31 = vst.msk [vmem:[#allocation5] sm:$0xff] %vm24_vm1, %v403_v25 }
   0x7   :  { %348 = vmatpush3.xpose.msk.msra.mxu0 %vm51_vm0, %v49_v1  ;;  %v34_v17 = vld [vmem:[%s559_s3 + $0x8] sm:$0xff]  ;;  %v326_v22 = vld [vmem:[%s560_s2] ss:$0 sm:$0xff]  ;;  %32 = vst.msk [vmem:[#allocation5 + $0x8] sm:$0xff] %vm24_vm1, %v403_v25 }
   0x8   :  { %349 = vmatprep.subr.msk.mxu0 %vm51_vm0, %v48_v2  ;;  %v181_v26 = vld [vmem:[%s561_s0] sm:$0xff]  ;;  %v182_v35 = vld [vmem:[%s561_s0 + $0x8] sm:$0xff] }
   0x9   :  { %v232_v27 = vld [vmem:[#allocation2] sm:$0xff]  ;;  %v233_v30 = vld [vmem:[#allocation2 + $0x8] sm:$0xff] }
   0xa   :  { %v323_v36 = vld [vmem:[%s562_s1] ss:$0 sm:$0xff]  ;;  %v246_v60 = vld [vmem:[#allocation3] sm:$0xff] }
   0xb   :  { %350 = vmatpush3.xpose.msk.msra.mxu0 %vm51_vm0, %v48_v2  ;;  %v247_v0 = vld [vmem:[#allocation3 + $0x8] sm:$0xff] }
   0xc   :  { %351 = vmatprep.subr.msk.mxu0 %vm51_vm0, %v47_v4 }
   0xd   :  { %v213_v51 = vld [vmem:[#allocation5] sm:$0xff] }
   0xe   :  { %v214_v56 = vld [vmem:[#allocation5 + $0x8] sm:$0xff] }
   0xf   :  { %352 = vmatpush3.xpose.msk.msra.mxu0 %vm51_vm0, %v47_v4 }
  0x10   :  { %353 = vmatprep.subr.msk.mxu0 %vm51_vm0, %v46_v5 }
  0x13   :  { %354 = vmatpush3.xpose.msk.msra.mxu0 %vm51_vm0, %v46_v5 }
  0x14   :  { %355 = vmatprep.subr.msk.mxu0 %vm51_vm0, %v45_v6 }
  0x17   :  { %356 = vmatpush3.xpose.msk.msra.mxu0 %vm51_vm0, %v45_v6  ;;  %v200_v6 = vld [vmem:[#allocation4] sm:$0xff] }
  0x18   :  { %357 = vmatprep.subr.msk.mxu0 %vm51_vm0, %v44_v7 }
  0x1b   :  { %358 = vmatpush3.xpose.msk.msra.mxu0 %vm51_vm0, %v44_v7 }
  0x1c   :  { %359 = vmatprep.subr.msk.mxu0 %vm51_vm0, %v43_v8 }
  0x1f   :  { %360 = vmatpush3.xpose.msk.msra.mxu0 %vm51_vm0, %v43_v8 }
  0x20   :  { %361 = vmatprep.subr.msk.mxu0 %vm51_vm0, %v42_v9 }
  0x23   :  { %362 = vmatpush3.xpose.msk.msra.mxu0 %vm51_vm0, %v42_v9 }
  0x24   :  { %363 = vmatprep.subr.msk.mxu0 %vm51_vm0, %v41_v10 }
  0x27   :  { %364 = vmatpush3.xpose.msk.msra.mxu0 %vm51_vm0, %v41_v10 }
  0x28   :  { %365 = vmatprep.subr.msk.mxu0 %vm51_vm0, %v40_v11 }
  0x2b   :  { %366 = vmatpush3.xpose.msk.msra.mxu0 %vm51_vm0, %v40_v11  ;;  %v201_v11 = vld [vmem:[#allocation4 + $0x8] sm:$0xff] }
  0x2c   :  { %367 = vmatprep.subr.msk.mxu0 %vm51_vm0, %v39_v12 }
  0x2f   :  { %368 = vmatpush3.xpose.msk.msra.mxu0 %vm51_vm0, %v39_v12 }
  0x30   :  { %369 = vmatprep.subr.msk.mxu0 %vm51_vm0, %v38_v13 }
  0x33   :  { %370 = vmatpush3.xpose.msk.msra.mxu0 %vm51_vm0, %v38_v13 }
  0x34   :  { %371 = vmatprep.subr.msk.mxu0 %vm51_vm0, %v37_v14 }
  0x37   :  { %372 = vmatpush3.xpose.msk.msra.mxu0 %vm51_vm0, %v37_v14 }
  0x38   :  { %373 = vmatprep.subr.msk.mxu0 %vm51_vm0, %v36_v15 }
  0x3b   :  { %374 = vmatpush3.xpose.msk.msra.mxu0 %vm51_vm0, %v36_v15 }
  0x3c   :  { %375 = vmatprep.subr.msk.mxu0 %vm51_vm0, %v35_v16 }
  0x3f   :  { %376 = vmatpush3.xpose.msk.msra.mxu0 %vm51_vm0, %v35_v16 }
  0x42   :  { %378 = vmatmul.mubr.msk.f32.vlgmr.msra.gmra.mxu0 %vm51_vm0, %v34_v17 }
 0x102   :  { %v379_v20 = vpop.f32.mrf.mxu0 }
 0x103   :  { %v231_v24 = vadd.f32 %v379_v20, %v326_v22 }
 0x104   :  { %v172_v21 = vpop.f32.mrf.mxu0 }
 0x105   :  { %v230_v23 = vadd.f32 %v326_v22, %v172_v21 }
 0x107   :  { %234 = vmax.xlane.f32.xlu0 %v230_v23 }
 0x10b   :  { %236 = vmax.xlane.f32.xlu0 %v231_v24 }
 0x121   :  { %185 = vperm.xlu0 %384, %v181_v26  }
 0x190   :  { %v235_v28 = vpop.xlane.xlu0 %234 }
 0x191   :  { %v238_v29 = vmax.f32 %v232_v27, %v235_v28 }
 0x193   :  { %v240_v31 = vsub.f32 %v232_v27, %v238_v29  ;;  %274 = vst.msk [vmem:[#allocation2] sm:$0xff] %vm24_vm1, %v238_v29  ;;  %252 = vperm.xlu1 %383, %v238_v29  }
 0x194   :  { %v237_v32 = vpop.xlane.xlu0 %236 }
 0x195   :  { %v239_v33 = vmax.f32 %v233_v30, %v237_v32  ;;  %v242_v54 = vmul.f32 1.442695, %v240_v31 }
 0x197   :  { %v241_v34 = vsub.f32 %v233_v30, %v239_v33  ;;  %275 = vst.msk [vmem:[#allocation2 + $0x8] sm:$0xff] %vm24_vm1, %v239_v33  ;;  %257 = vperm.xlu1 %383, %v239_v33  }
 0x199   :  { %v244_v55 = vmul.f32 1.442695, %v241_v34 }
 0x19b   :  { %188 = vperm.xlu1 %383, %v182_v35  }
 0x19c   :  { %v186_v37 = vpop.permute.xlu0 %185 }
 0x19d   :  { %vm194_vm2 = vcmp.eq.s32.totalorder %v186_v37, %v323_v36 }
 0x19e   :  { %v324_v38 = vsel %vm194_vm2, 1.0, %v403_v25  ;;  %v288_v27 = vld [vmem:[#allocation2 + $0x8] sm:$0xff] }
 0x19f   :  { %v202_v49 = vmul.f32 %v324_v38, %v172_v21  ;;  %v287_v21 = vld [vmem:[#allocation2] sm:$0xff] }
 0x1bf   :  { %215 = vadd.xlane.f32.xlu1 %v324_v38 }
 0x20e   :  { %v253_v39 = vpop.permute.xlu1 %252 }
 0x20f   :  { %v260_v40 = vsub.f32 %v230_v23, %v253_v39 }
 0x211   :  { %v262_v41 = vmul.f32 1.442695, %v260_v40 }
 0x212   :  { %v258_v42 = vpop.permute.xlu1 %257 }
 0x213   :  { %385 = vpow2.f32 %v262_v41  ;;  %v261_v43 = vsub.f32 %v231_v24, %v258_v42 }
 0x215   :  { %v264_v44 = vmul.f32 1.442695, %v261_v43 }
 0x216   :  { %v189_v45 = vpop.permute.xlu1 %188 }
 0x217   :  { %387 = vpow2.f32 %v264_v44  ;;  %vm195_vm3 = vcmp.eq.s32.totalorder %v189_v45, %v323_v36 }
 0x218   :  { %v325_v46 = vsel %vm195_vm3, 1.0, %v403_v25  ;;  %389 = vpow2.f32 %v242_v54 }
 0x219   :  { %217 = vadd.xlane.f32.xlu1 %v325_v46  ;;  %v203_v50 = vmul.f32 %v379_v20, %v325_v46  ;;  %391 = vpow2.f32 %v244_v55 }
 0x220   :  { %v386_v47 = vpop.eup %385 }
 0x221   :  { %266 = vadd.xlane.f32.xlu0 %v386_v47 }
 0x224   :  { %v388_v48 = vpop.eup %387 }
 0x225   :  { %268 = vadd.xlane.f32.xlu1 %v388_v48  ;;  %v390_v59 = vpop.eup %389 }
 0x226   :  { %v248_v61 = vmul.f32 %v390_v59, %v246_v60  ;;  %v392_v62 = vpop.eup %391 }
 0x227   :  { %v249_v3 = vmul.f32 %v392_v62, %v247_v0 }
 0x229   :  { %204 = vadd.xlane.f32.xlu1 %v202_v49 }
 0x22d   :  { %206 = vadd.xlane.f32.xlu1 %v203_v50 }
 0x248   :  { %v216_v52 = vpop.xlane.xlu1 %215 }
 0x249   :  { %v219_v53 = vadd.f32 %v216_v52, %v213_v51 }
 0x24b   :  { %221 = vst.msk [vmem:[#allocation5] sm:$0xff] %vm24_vm1, %v219_v53 }
 0x252   :  { %v279_v2 = vld [vmem:[#allocation5] sm:$0xff] }
 0x253   :  { %393 = vrcp.f32 %v279_v2 }
 0x260   :  { %v394_v15 = vpop.eup %393 }
 0x2a2   :  { %v218_v57 = vpop.xlane.xlu1 %217 }
 0x2a3   :  { %v220_v58 = vadd.f32 %v218_v57, %v214_v56 }
 0x2a5   :  { %222 = vst.msk [vmem:[#allocation5 + $0x8] sm:$0xff] %vm24_vm1, %v220_v58 }
 0x2aa   :  { %v267_v63 = vpop.xlane.xlu0 %266 }
 0x2ab   :  { %v270_v1 = vadd.f32 %v267_v63, %v248_v61 }
 0x2ac   :  { %v280_v7 = vld [vmem:[#allocation5 + $0x8] sm:$0xff] }
 0x2ad   :  { %272 = vst.msk [vmem:[#allocation3] sm:$0xff] %vm24_vm1, %v270_v1  ;;  %395 = vrcp.f32 %v280_v7 }
 0x2ae   :  { %v269_v4 = vpop.xlane.xlu1 %268 }
 0x2af   :  { %v271_v5 = vadd.f32 %v269_v4, %v249_v3 }
 0x2b1   :  { %273 = vst.msk [vmem:[#allocation3 + $0x8] sm:$0xff] %vm24_vm1, %v271_v5 }
 0x2b2   :  { %v205_v8 = vpop.xlane.xlu1 %204 }
 0x2b3   :  { %v208_v9 = vadd.f32 %v205_v8, %v200_v6 }
 0x2b4   :  { %v291_v10 = vld [vmem:[#allocation3] sm:$0xff] }
 0x2b5   :  { %397 = vlog2.f32 %v291_v10  ;;  %211 = vst.msk [vmem:[#allocation4] sm:$0xff] %vm24_vm1, %v208_v9 }
 0x2b6   :  { %v207_v12 = vpop.xlane.xlu1 %206 }
 0x2b7   :  { %v209_v13 = vadd.f32 %v207_v12, %v201_v11 }
 0x2b8   :  { %v292_v14 = vld [vmem:[#allocation3 + $0x8] sm:$0xff] }
 0x2b9   :  { %399 = vlog2.f32 %v292_v14  ;;  %212 = vst.msk [vmem:[#allocation4 + $0x8] sm:$0xff] %vm24_vm1, %v209_v13 }
 0x2ba   :  { %v396_v19 = vpop.eup %395 }
 0x2bc   :  { %v283_v16 = vld [vmem:[#allocation4] sm:$0xff] }
 0x2bd   :  { %v285_v17 = vmul.f32 %v394_v15, %v283_v16 }
 0x2bf   :  { %v289_v23 = vsub.f32 %v285_v17, %v287_v21 }
 0x2c0   :  { %v284_v18 = vld [vmem:[#allocation4 + $0x8] sm:$0xff] }
 0x2c1   :  { %v286_v24 = vmul.f32 %v396_v19, %v284_v18 }
 0x2c2   :  { %v398_v20 = vpop.eup %397 }
 0x2c3   :  { %v294_v22 = vmul.f32 0.6931472, %v398_v20  ;;  %v290_v29 = vsub.f32 %v286_v24, %v288_v27 }
 0x2c5   :  { %v297_v25 = vsub.f32 %v289_v23, %v294_v22 }
 0x2c6   :  { %v400_v26 = vpop.eup %399 }
 0x2c7   :  { %v296_v28 = vmul.f32 0.6931472, %v400_v26  ;;  %299 = vst.msk [vmem:[%s563_s5] sm:$0xff] %vm24_vm1, %v297_v25 }
 0x2c9   :  { %v298_v30 = vsub.f32 %v290_v29, %v296_v28 }
 0x2cb   :  { %300 = vst.msk [vmem:[%s563_s5 + $0x8] sm:$0xff] %vm24_vm1, %v298_v30 }

</bundles_post_ra>
